<compile_context>
chip_gen: v7x
topology: tpu7x:2x2x1
jax: 0.10.0
libtpu: 0.0.40
codegen_flags: <defaults>
</compile_context>

<pallas_src>
import jax
import jax.numpy as jnp
from jax.experimental import pallas as pl
from jax.experimental.pallas import tpu as pltpu


def channel_attention_kernel(scale_ref, gf_ref, out_ref):
    """Grid = (row_tile, hw_tile); both axes independent ("parallel").

    scale_ref : (TR, 1)  per-row (i.e. per (n, c)) attention scale
    gf_ref    : (TR, TL) global-feature tile, rows on sublanes, spatial on lanes
    out_ref   : (TR, TL)
    """
    out_ref[...] = gf_ref[...] * scale_ref[...]


def _pick_tiles(R, HW, itemsize, budget_bytes=6 * 1024 * 1024):
    """Pick an (8,128)-aligned (TR, TL) block for a (R, HW) array such that the
    block stays within `budget_bytes`. Full dims are used when they fit (always
    legal). Both dims are clamped against the budget, so the block never
    exceeds it even for very large R or HW."""
    LANE, SUB = 128, 8
    max_elems = max(SUB * LANE, budget_bytes // max(1, itemsize))

    # Lane (last) dim: full HW if it fits at the minimum sublane height,
    # otherwise the largest multiple of 128 that fits.
    if HW <= LANE or SUB * HW <= max_elems:
        TL = HW
    else:
        TL = max(LANE, min(HW // LANE, max_elems // (SUB * LANE)) * LANE)

    # Sublane (second-last) dim: full R if it fits, otherwise the largest
    # multiple of 8 that keeps (TR, TL) within the budget.
    if R <= SUB or R * TL <= max_elems:
        TR = R
    else:
        TR = max(SUB, min(R // SUB, max_elems // (SUB * TL)) * SUB)

    return int(TR), int(TL)


def channel_attention(global_feats, instance_feats, weight, bias):
    """global_feats  : (N, C, H, W)  NCHW (PyTorch convention)
       instance_feats: (N, Cin)
       weight        : (Cout, Cin)   (PyTorch nn.Linear layout)
       bias          : (Cout,)
    Returns (N, Cout, H, W)."""
    N, C, H, W = global_feats.shape
    Cin = instance_feats.shape[1]
    Cout = weight.shape[0]
    assert C == Cout, "out_channels of the Linear must match global_feats channels"
    HW = H * W
    R = N * C

    dtype = global_feats.dtype
    itemsize = jnp.dtype(dtype).itemsize

    # Tiny Linear in the wrapper (plain XLA): (N, Cin) @ (Cin, Cout) + bias.
    # Computed in the activation dtype to match the PyTorch module's promotion.
    attn = (jnp.dot(instance_feats, weight.T) + bias).astype(dtype)   # (N, Cout)
    scale = attn.reshape(R, 1)                                        # (N*C, 1)

    # Contiguous (free) reshape: channels folded into rows, spatial on lanes.
    gf = global_feats.reshape(R, HW)

    TR, TL = _pick_tiles(R, HW, itemsize)
    grid = (pl.cdiv(R, TR), pl.cdiv(HW, TL))

    # VMEM limit derived from the actually-chosen block:
    # 2 double-buffered copies each of the input and output block + headroom.
    block_bytes = TR * TL * itemsize
    vmem_limit = min(48 * 1024 * 1024, 4 * block_bytes + 4 * 1024 * 1024)
    vmem_limit = max(vmem_limit, 16 * 1024 * 1024)

    # Advisory cost: HBM-bandwidth bound (read gf + scale, write out).
    cost = pl.CostEstimate(
        flops=R * HW,
        transcendentals=0,
        bytes_accessed=2 * R * HW * itemsize + R * itemsize,
    )

    out = pl.pallas_call(
        channel_attention_kernel,
        out_shape=jax.ShapeDtypeStruct((R, HW), dtype),
        grid=grid,
        in_specs=[
            pl.BlockSpec((TR, 1), lambda r, t: (r, 0)),    # per-row scale
            pl.BlockSpec((TR, TL), lambda r, t: (r, t)),   # global feats tile
        ],
        out_specs=pl.BlockSpec((TR, TL), lambda r, t: (r, t)),
        compiler_params=pltpu.CompilerParams(
            dimension_semantics=("parallel", "parallel"),
            vmem_limit_bytes=vmem_limit,
        ),
        cost_estimate=cost,
    )(scale, gf)

    return out.reshape(N, C, H, W)


if __name__ == "__main__":
    # Small shapes consistent with the module.
    N, Cin, Cout, H, W = 2, 4, 4, 16, 16

    key = jax.random.PRNGKey(0)
    k_gf, k_inst, k_w, k_b = jax.random.split(key, 4)

    global_feats = jax.random.normal(k_gf, (N, Cout, H, W), dtype=jnp.float32)
    instance_feats = jax.random.normal(k_inst, (N, Cin), dtype=jnp.float32)

    # Deterministic parameter init (mimics nn.Linear default uniform bound).
    bound = 1.0 / jnp.sqrt(jnp.float32(Cin))
    weight = jax.random.uniform(k_w, (Cout, Cin), jnp.float32, -bound, bound)
    bias = jax.random.uniform(k_b, (Cout,), jnp.float32, -bound, bound)

    out = channel_attention(global_feats, instance_feats, weight, bias)
    out = jax.block_until_ready(out)

    # Pure-JAX reference (same semantics as the PyTorch forward).
    attn_ref = instance_feats @ weight.T + bias                     # (N, Cout)
    ref = global_feats * attn_ref[:, :, None, None]                 # (N, Cout, H, W)
    assert out.shape == ref.shape
    assert jnp.allclose(out, ref, atol=1e-5, rtol=1e-5)

    print("KERNEL_OK")
</pallas_src>

<mosaic_0001>
module attributes {stable_mosaic.version = 11 : i64} {
  func.func @channel_attention_kernel(%arg0: i32, %arg1: i32, %arg2: memref<8x1xf32, #tpu.memory_space<vmem>>, %arg3: memref<8x256xf32, #tpu.memory_space<vmem>>, %arg4: memref<8x256xf32, #tpu.memory_space<vmem>>) attributes {dimension_semantics = [#tpu.dimension_semantics<parallel>, #tpu.dimension_semantics<parallel>], iteration_bounds = array<i64: 1, 1>, scalar_prefetch = 0 : i64, scratch_operands = 0 : i64, tpu.core_type = #tpu.core_type<tc>, window_params = [{transform_indices = @transform_0, window_bounds = array<i64: 8, 1>}, {transform_indices = @transform_1, window_bounds = array<i64: 8, 256>}, {transform_indices = @transform_2, window_bounds = array<i64: 8, 256>}]} {
    %c0 = arith.constant 0 : index
    %c0_0 = arith.constant 0 : index
    %0 = vector.load %arg3[%c0, %c0_0] : memref<8x256xf32, #tpu.memory_space<vmem>>, vector<8x256xf32>
    %c0_1 = arith.constant 0 : index
    %c0_2 = arith.constant 0 : index
    %1 = vector.load %arg2[%c0_1, %c0_2] : memref<8x1xf32, #tpu.memory_space<vmem>>, vector<8x1xf32>
    %2 = vector.broadcast %1 : vector<8x1xf32> to vector<8x256xf32>
    %3 = arith.mulf %0, %2 : vector<8x256xf32>
    %c0_3 = arith.constant 0 : index
    %c0_4 = arith.constant 0 : index
    %4 = vector.load %arg4[%c0_3, %c0_4] : memref<8x256xf32, #tpu.memory_space<vmem>>, vector<8x256xf32>
    tpu.vector_store %arg4[%c0_3, %c0_4], %3 {strides = array<i32>} : memref<8x256xf32, #tpu.memory_space<vmem>>, vector<8x256xf32>,
    return
  }
  func.func @transform_0(%arg0: i32, %arg1: i32) -> (i32, i32) {
    %c0_i32 = arith.constant 0 : i32
    %c0_i32_0 = arith.constant 0 : i32
    return %arg0, %c0_i32 : i32, i32
  }
  func.func @transform_1(%arg0: i32, %arg1: i32) -> (i32, i32) {
    %c0_i32 = arith.constant 0 : i32
    return %arg0, %arg1 : i32, i32
  }
  func.func @transform_2(%arg0: i32, %arg1: i32) -> (i32, i32) {
    %c0_i32 = arith.constant 0 : i32
    return %arg0, %arg1 : i32, i32
  }
}

</mosaic_0001>

<bundles_post_ra>
// kernel: tpu_custom_call.1
= control target key start
LH: loop header
LB: loop body
LE: loop exit
PB: predicated region body
PF: predicated region fallthrough
CT: control target
= control target key end

     0   :  { %7 = vsyncpa [#allocation3], 0  ;;  %s148_s0 = inlined_call_operand.vmem [shape: f32[8,1], index: 0, kind: input, shape index: {}]   ;;  %s149_s1 = inlined_call_operand.hbm [shape: f32[8,256], index: 1, kind: input, shape index: {}]   ;;  %s150_s2 = inlined_call_operand.hbm [shape: f32[8,256], index: 2, kind: output, shape index: {}]  }
   0x1   :  { %8 = vsyncpa [#allocation4], 0  ;;  %s103_s9 = smov [#allocation2]   ;;  %s55_s13 = scalar_lea.hbm %s149_s1, 256 }
   0x2   :  { %s17_s10 = sshll.u32 %s103_s9, 4  ;;  %p56_p0 = scmp.ne.s32.totalorder %s149_s1, %s55_s13  ;;  %s18_s10 = int_to_ptr.vmem [resolvable:$true] %s17_s10 }
   0x3   :  { %p59_p1 = scmp.lt.u32.totalorder %s55_s13, %s149_s1 }
   0x5   :  { %p61_p2 = pnand %p59_p1, %p56_p0 }
   0x7   :  { %64 = shalt.err (!%p61_p2)
}
   0x8   :  { %s65_s18 = scalar_lea.vmem %s18_s10, 256  ;;  %p70_p4 = scmp.lt.s32.totalorder %s18_s10, %s18_s10 }
   0x9   :  { %p66_p3 = scmp.ne.s32.totalorder %s18_s10, %s65_s18  ;;  %p71_p5 = scmp.lt.s32.totalorder %s65_s18, %s65_s18 }
   0xb   :  { %p72_p6 = por %p71_p5, %p70_p4 }
   0xd   :  { %p73_p7 = pnand %p72_p6, %p66_p3 }
   0xf   :  { %76 = shalt.err (!%p73_p7)
}
  0x10   :  { %20 = dma.hbm_to_vmem [thread:$0]  %s149_s1, 256, %s18_s10, [#allocation3]  }
  0x11   :  { %99 = dma.done.wait [#allocation3], 256  }
  0x12   :  { %100 = vsyncadd [#allocation3], 4294967040  ;;  %v104_v0 = vmov 0   ;;  %v26_v1 = vld [vmem:[%s148_s0] sm:$0xff]  ;;  %v25_v3 = vld [vmem:[#allocation2 + $0x8] sm:$0xff]  ;;  %s105_s23 = smov [#allocation5]  }
  0x13   :  { %54 = vset.pattern.permute.xlu0 %v104_v0  ;;  %v24_v2 = vld [vmem:[#allocation2] sm:$0xff]  ;;  %s42_s24 = sshll.u32 %s105_s23, 4  ;;  %s43_s24 = int_to_ptr.vmem [resolvable:$true] %s42_s24 }
  0x14   :  { %29 = vperm.xlu0 %54, %v26_v1   ;;  %s77_s1 = scalar_lea.vmem %s43_s24, 256  ;;  %p82_p9 = scmp.lt.s32.totalorder %s43_s24, %s43_s24 }
  0x15   :  { %p78_p8 = scmp.ne.s32.totalorder %s43_s24, %s77_s1  ;;  %p83_p10 = scmp.lt.s32.totalorder %s77_s1, %s77_s1 }
  0x17   :  { %p84_p11 = por %p83_p10, %p82_p9 }
  0x19   :  { %p85_p12 = pnand %p84_p11, %p78_p8 }
  0x93   :  { %v30_v4 = vpop.permute.xlu0 %29 }
  0x94   :  { %v32_v5 = vmul.f32 %v30_v4, %v24_v2  ;;  %v33_v6 = vmul.f32 %v30_v4, %v25_v3 }
  0x96   :  { %34 = vst [vmem:[#allocation5] sm:$0xff] %v32_v5  ;;  %35 = vst [vmem:[#allocation5 + $0x8] sm:$0xff] %v33_v6 }
  0x97   :  { %88 = shalt.err (!%p85_p12)
}
  0x98   :  { %s89_s26 = scalar_lea.hbm %s150_s2, 256 }
  0x99   :  { %p90_p13 = scmp.ne.s32.totalorder %s150_s2, %s89_s26  ;;  %p93_p0 = scmp.lt.u32.totalorder %s89_s26, %s150_s2 }
  0x9b   :  { %p95_p1 = pnand %p93_p0, %p90_p13 }
  0x9d   :  { %98 = shalt.err (!%p95_p1)
}
  0x9e   :  { %45 = dma.vmem_to_hbm [thread:$0]  %s43_s24, 256, %s150_s2, [#allocation4]  }
  0x9f   :  { %101 = dma.done.wait [#allocation4], 256  }
  0xa0   :  { %102 = vsyncadd [#allocation4], 4294967040 }
  0xa1   :  { %49 = vsyncpa [#allocation3], 1 }
  0xa2   :  { %50 = vsyncpa [#allocation4], 1 }

</bundles_post_ra>
